<compile_context>
chip_gen: v7x
topology: tpu7x:2x2x1
jax: 0.10.0
libtpu: 0.0.40
codegen_flags: <defaults>
</compile_context>

<pallas_src>
import functools

import jax
import jax.numpy as jnp
from jax.experimental import pallas as pl
from jax.experimental.pallas import tpu as pltpu


def _spatial_attention_kernel(wm_ref, x_ref, o_ref, sum_ref, max_ref,
                              *, width, inv_c):
    # wm_ref:  (18, L) f32 VMEM  weight-folded per-tap border masks
    #                            rows 0..8 -> avg channel, rows 9..17 -> max channel
    # x_ref:   (NB, TC, L) VMEM  batch-block x channel-block x flattened spatial
    # o_ref:   (NB, L)     VMEM  conv output (singleton out-channel squeezed)
    # sum_ref: (NB, L) f32 VMEM  running channel sum (scratch, persists across k)
    # max_ref: (NB, L) f32 VMEM  running channel max (scratch, persists across k)
    k = pl.program_id(1)
    nb = x_ref.shape[0]
    length = x_ref.shape[2]

    @pl.when(k == 0)
    def _init():
        sum_ref[...] = jnp.zeros(sum_ref.shape, sum_ref.dtype)
        max_ref[...] = jnp.full(max_ref.shape, -jnp.inf, max_ref.dtype)

    # Per-batch-row load + immediate reduce: never materializes the whole
    # (NB, TC, L) block in vregs; accumulates straight into VMEM scratch.
    for b in range(nb):
        xb = x_ref[b].astype(jnp.float32)                          # (TC, L)
        sum_ref[pl.ds(b, 1), :] += jnp.sum(xb, axis=0, keepdims=True)
        max_ref[pl.ds(b, 1), :] = jnp.maximum(
            max_ref[pl.ds(b, 1), :], jnp.max(xb, axis=0, keepdims=True))

    @pl.when(k == pl.num_programs(1) - 1)
    def _finalize():
        avg = sum_ref[...] * inv_c                                 # (NB, L) mean over C
        mx = max_ref[...]                                          # (NB, L) max  over C
        wm = wm_ref[...]                                           # load once; static slice per tap

        acc = jnp.zeros(avg.shape, jnp.float32)
        for kh in range(3):
            for kw in range(3):
                tap = kh * 3 + kw
                shift = (kh - 1) * width + (kw - 1)                # flat-axis source offset
                if shift == 0:
                    r_avg, r_max = avg, mx
                else:
                    # shifted[p] = f[p + shift]  ->  roll by (-shift) mod L (XLU rotate)
                    amt = (-shift) % length
                    r_avg = pltpu.roll(avg, amt, axis=1)
                    r_max = pltpu.roll(mx, amt, axis=1)
                acc = acc + r_avg * wm[tap:tap + 1, :] + r_max * wm[9 + tap:10 + tap, :]

        o_ref[...] = acc.astype(o_ref.dtype)


def _largest_divisor_leq(n, cap):
    cap = int(max(1, min(n, cap)))
    for d in range(cap, 0, -1):
        if n % d == 0:
            return d
    return 1


def _vmem_capacity_bytes():
    try:
        info = pltpu.get_tpu_info()
        cap = int(getattr(info, "vmem_capacity_bytes", 0))
        if cap > 0:
            return cap
    except Exception:
        pass
    return 64 << 20  # conservative fallback: v7x per-TensorCore VMEM


def _weighted_tap_masks(h, w, l_pad, weight):
    """(18, L_pad) f32: row tap (avg ch) / 9+tap (max ch) =
    conv_weight[tap] * 1{output lane in-image AND tap source in-bounds}."""
    idx = jnp.arange(l_pad, dtype=jnp.int32)
    row = idx // w
    col = idx % w
    in_img = idx < (h * w)
    masks = []
    for dh in (-1, 0, 1):
        for dw in (-1, 0, 1):
            ok = in_img & (row + dh >= 0) & (row + dh <= h - 1)
            ok = ok & (col + dw >= 0) & (col + dw <= w - 1)
            masks.append(ok)
    m = jnp.stack(masks, axis=0).astype(jnp.float32)               # (9, L_pad)
    w2 = weight.astype(jnp.float32).reshape(2, 9)                  # ch0 = avg, ch1 = max
    return jnp.concatenate([w2[0][:, None] * m, w2[1][:, None] * m], axis=0)


def spatial_attention(x, weight):
    """x: (N, C, H, W); weight: (1, 2, 3, 3) OIHW conv filter (no bias).
    Returns conv(concat([mean_C(x), max_C(x)], axis=1)) of shape (N, 1, H, W)."""
    n, c, h, w = x.shape
    l_raw = h * w
    l_pad = ((l_raw + 127) // 128) * 128                  # lane-dense last dim

    x_flat = x.reshape(n, c, l_raw)                        # free reshape; dtype kept as-is
    if l_pad != l_raw:
        x_flat = jnp.pad(x_flat, ((0, 0), (0, 0), (0, l_pad - l_raw)))
    wm = _weighted_tap_masks(h, w, l_pad, weight)          # (18, L_pad) f32

    itemsize = jnp.dtype(x.dtype).itemsize                 # bf16 input stays bf16 in HBM/VMEM
    vmem_cap = _vmem_capacity_bytes()
    resident_budget = vmem_cap // 4                        # stay well under scoped default on all gens

    # Batch block: cap at N//2 so the "parallel" axis keeps both v7x TCs busy.
    nb = _largest_divisor_leq(n, max(1, n // 2))
    fixed_bytes = wm.size * 4 + 2 * nb * l_pad * 4 + 2 * nb * l_pad * itemsize
    x_buf_budget = max(nb * l_pad * itemsize,
                       (resident_budget - fixed_bytes) // 2)       # double-buffered x
    tc = _largest_divisor_leq(c, max(1, x_buf_budget // (nb * l_pad * itemsize)))
    # TODO(synk): add an L-tiling path (reduce over L tiles + conv with a +/-W halo)
    # for very large H*W where even a (nb=1, tc=1, L) block would overflow the budget.

    grid = (n // nb, c // tc)                              # channel (reduction) axis last

    x_index = lambda b, k: (b, k, 0)
    x_block_bytes = nb * tc * l_pad * itemsize
    x_spec = pl.BlockSpec((nb, tc, l_pad), x_index)
    if x_block_bytes < (512 << 10) and grid[0] * grid[1] >= 3:
        # Small blocks: compute is trivial, so the pipeline is DMA-latency
        # exposed; a third input buffer hides it.
        try:
            x_spec = pl.BlockSpec((nb, tc, l_pad), x_index,
                                  pipeline_mode=pl.Buffered(3))
        except TypeError:
            pass  # jax without pipeline_mode kwarg: default double-buffering

    # Only raise the scoped-VMEM limit when the chosen tiles actually need it.
    est_total = 2 * x_block_bytes + fixed_bytes
    vmem_limit = None
    if est_total > (14 << 20):
        vmem_limit = int(min(vmem_cap - (8 << 20), 2 * est_total))

    kernel = functools.partial(_spatial_attention_kernel, width=w, inv_c=1.0 / c)

    out_flat = pl.pallas_call(
        kernel,
        out_shape=jax.ShapeDtypeStruct((n, 1, l_pad), x.dtype),
        grid=grid,
        in_specs=[
            pl.BlockSpec((18, l_pad), lambda b, k: (0, 0)),        # weight-folded tap masks
            x_spec,                                                # x block
        ],
        out_specs=pl.BlockSpec((nb, None, l_pad), lambda b, k: (b, 0, 0)),
        scratch_shapes=[
            pltpu.VMEM((nb, l_pad), jnp.float32),                  # running channel sum
            pltpu.VMEM((nb, l_pad), jnp.float32),                  # running channel max
        ],
        compiler_params=pltpu.CompilerParams(
            dimension_semantics=("parallel", "arbitrary"),
            vmem_limit_bytes=vmem_limit),
    )(wm, x_flat)

    out = out_flat[:, :, :l_raw] if l_pad != l_raw else out_flat
    return out.reshape(n, 1, h, w)


def _reference(x, weight):
    avg = jnp.mean(x, axis=1, keepdims=True)
    mx = jnp.max(x, axis=1, keepdims=True)
    f = jnp.concatenate([avg, mx], axis=1)
    return jax.lax.conv_general_dilated(
        f, weight, window_strides=(1, 1), padding=((1, 1), (1, 1)),
        dimension_numbers=("NCHW", "OIHW", "NCHW"))


if __name__ == "__main__":
    key = jax.random.PRNGKey(0)
    kx, kw = jax.random.split(key)

    N, C, H, W = 2, 4, 16, 16
    x = jax.random.normal(kx, (N, C, H, W), dtype=jnp.float32)

    # Deterministic conv weight, shape (out=1, in=2, kH=3, kW=3), no bias
    # (matches nn.Conv2d(2, 1, 3, padding=1, bias=False); synthetic init).
    fan_in = 2 * 3 * 3
    bound = 1.0 / (fan_in ** 0.5)
    weight = jax.random.uniform(kw, (1, 2, 3, 3), jnp.float32,
                                minval=-bound, maxval=bound)

    out = spatial_attention(x, weight)
    out = jax.block_until_ready(out)

    ref = _reference(x, weight)
    assert out.shape == (N, 1, H, W)
    assert jnp.allclose(out, ref, atol=1e-5, rtol=1e-5), "mismatch vs reference"

    print("KERNEL_OK")
</pallas_src>

<mosaic_0001>
module attributes {stable_mosaic.version = 11 : i64} {
  func.func @_spatial_attention_kernel(%arg0: i32, %arg1: i32, %arg2: memref<18x256xf32, #tpu.memory_space<vmem>>, %arg3: memref<1x4x256xf32, #tpu.memory_space<vmem>>, %arg4: memref<1x1x256xf32, #tpu.memory_space<vmem>>, %arg5: memref<1x256xf32, #tpu.memory_space<vmem>>, %arg6: memref<1x256xf32, #tpu.memory_space<vmem>>) attributes {dimension_semantics = [#tpu.dimension_semantics<parallel>, #tpu.dimension_semantics<arbitrary>], iteration_bounds = array<i64: 2, 1>, scalar_prefetch = 0 : i64, scratch_operands = 2 : i64, tpu.core_type = #tpu.core_type<tc>, window_params = [{pipeline_mode = #tpu.pipeline_mode<synchronous>, transform_indices = @transform_0, window_bounds = array<i64: 18, 256>}, {transform_indices = @transform_1, window_bounds = array<i64: 1, 4, 256>}, {transform_indices = @transform_2, window_bounds = array<i64: 1, 1, 256>}]} {
    %c0_i32 = arith.constant 0 : i32
    %0 = arith.cmpi eq, %arg1, %c0_i32 : i32
    %1 = arith.extui %0 : i1 to i32
    %c0_i32_0 = arith.constant 0 : i32
    %2 = arith.cmpi ne, %1, %c0_i32_0 : i32
    scf.if %2 {
      %cst_14 = arith.constant 0.000000e+00 : f32
      %18 = vector.broadcast %cst_14 : f32 to vector<1x256xf32>
      %c0_15 = arith.constant 0 : index
      %c0_16 = arith.constant 0 : index
      %19 = vector.load %arg5[%c0_15, %c0_16] : memref<1x256xf32, #tpu.memory_space<vmem>>, vector<1x256xf32>
      tpu.vector_store %arg5[%c0_15, %c0_16], %18 {strides = array<i32>} : memref<1x256xf32, #tpu.memory_space<vmem>>, vector<1x256xf32>,
      %cst_17 = arith.constant 0xFF800000 : f32
      %20 = vector.broadcast %cst_17 : f32 to vector<1x256xf32>
      %c0_18 = arith.constant 0 : index
      %c0_19 = arith.constant 0 : index
      %21 = vector.load %arg6[%c0_18, %c0_19] : memref<1x256xf32, #tpu.memory_space<vmem>>, vector<1x256xf32>
      tpu.vector_store %arg6[%c0_18, %c0_19], %20 {strides = array<i32>} : memref<1x256xf32, #tpu.memory_space<vmem>>, vector<1x256xf32>,
    } else {
    }
    %c0 = arith.constant 0 : index
    %c0_1 = arith.constant 0 : index
    %c0_2 = arith.constant 0 : index
    %3 = vector.load %arg3[%c0, %c0_1, %c0_2] : memref<1x4x256xf32, #tpu.memory_space<vmem>>, vector<1x4x256xf32>
    %4 = vector.shape_cast %3 : vector<1x4x256xf32> to vector<4x256xf32>
    %c0_3 = arith.constant 0 : index
    %c0_4 = arith.constant 0 : index
    %5 = vector.load %arg5[%c0_3, %c0_4] : memref<1x256xf32, #tpu.memory_space<vmem>>, vector<1x256xf32>
    %cst = arith.constant dense<0.000000e+00> : vector<256xf32>
    %6 = vector.multi_reduction <add>, %4, %cst [0] : vector<4x256xf32> to vector<256xf32>
    %7 = vector.shape_cast %6 : vector<256xf32> to vector<1x256xf32>
    %8 = arith.addf %5, %7 : vector<1x256xf32>
    %c0_5 = arith.constant 0 : index
    %c0_6 = arith.constant 0 : index
    %9 = vector.load %arg5[%c0_5, %c0_6] : memref<1x256xf32, #tpu.memory_space<vmem>>, vector<1x256xf32>
    tpu.vector_store %arg5[%c0_5, %c0_6], %8 {strides = array<i32>} : memref<1x256xf32, #tpu.memory_space<vmem>>, vector<1x256xf32>,
    %c0_7 = arith.constant 0 : index
    %c0_8 = arith.constant 0 : index
    %10 = vector.load %arg6[%c0_7, %c0_8] : memref<1x256xf32, #tpu.memory_space<vmem>>, vector<1x256xf32>
    %cst_9 = arith.constant dense<0xFF800000> : vector<256xf32>
    %11 = vector.multi_reduction <maximumf>, %4, %cst_9 [0] : vector<4x256xf32> to vector<256xf32>
    %12 = vector.shape_cast %11 : vector<256xf32> to vector<1x256xf32>
    %13 = arith.maximumf %10, %12 : vector<1x256xf32>
    %c0_10 = arith.constant 0 : index
    %c0_11 = arith.constant 0 : index
    %14 = vector.load %arg6[%c0_10, %c0_11] : memref<1x256xf32, #tpu.memory_space<vmem>>, vector<1x256xf32>
    tpu.vector_store %arg6[%c0_10, %c0_11], %13 {strides = array<i32>} : memref<1x256xf32, #tpu.memory_space<vmem>>, vector<1x256xf32>,
    %c0_i32_12 = arith.constant 0 : i32
    %15 = arith.cmpi eq, %arg1, %c0_i32_12 : i32
    %16 = arith.extui %15 : i1 to i32
    %c0_i32_13 = arith.constant 0 : i32
    %17 = arith.cmpi ne, %16, %c0_i32_13 : i32
    scf.if %17 {
      %c0_14 = arith.constant 0 : index
      %c0_15 = arith.constant 0 : index
      %18 = vector.load %arg5[%c0_14, %c0_15] : memref<1x256xf32, #tpu.memory_space<vmem>>, vector<1x256xf32>
      %cst_16 = arith.constant 2.500000e-01 : f32
      %19 = vector.broadcast %cst_16 : f32 to vector<1x256xf32>
      %20 = arith.mulf %18, %19 : vector<1x256xf32>
      %c0_17 = arith.constant 0 : index
      %c0_18 = arith.constant 0 : index
      %21 = vector.load %arg6[%c0_17, %c0_18] : memref<1x256xf32, #tpu.memory_space<vmem>>, vector<1x256xf32>
      %c0_19 = arith.constant 0 : index
      %c0_20 = arith.constant 0 : index
      %22 = vector.load %arg2[%c0_19, %c0_20] : memref<18x256xf32, #tpu.memory_space<vmem>>, vector<18x256xf32>
      %cst_21 = arith.constant 0.000000e+00 : f32
      %23 = vector.broadcast %cst_21 : f32 to vector<1x256xf32>
      %c17_i32 = arith.constant 17 : i32
      %24 = tpu.dynamic_rotate %20 by %c17_i32 dim 1 : vector<1x256xf32>, i32 -> vector<1x256xf32>
      %c17_i32_22 = arith.constant 17 : i32
      %25 = tpu.dynamic_rotate %21 by %c17_i32_22 dim 1 : vector<1x256xf32>, i32 -> vector<1x256xf32>
      %26 = vector.extract_strided_slice %22 {offsets = [0, 0], sizes = [1, 256], strides = [1, 1]} : vector<18x256xf32> to vector<1x256xf32>
      %27 = arith.mulf %24, %26 : vector<1x256xf32>
      %28 = arith.addf %23, %27 : vector<1x256xf32>
      %29 = vector.extract_strided_slice %22 {offsets = [9, 0], sizes = [1, 256], strides = [1, 1]} : vector<18x256xf32> to vector<1x256xf32>
      %30 = arith.mulf %25, %29 : vector<1x256xf32>
      %31 = arith.addf %28, %30 : vector<1x256xf32>
      %c16_i32 = arith.constant 16 : i32
      %32 = tpu.dynamic_rotate %20 by %c16_i32 dim 1 : vector<1x256xf32>, i32 -> vector<1x256xf32>
      %c16_i32_23 = arith.constant 16 : i32
      %33 = tpu.dynamic_rotate %21 by %c16_i32_23 dim 1 : vector<1x256xf32>, i32 -> vector<1x256xf32>
      %34 = vector.extract_strided_slice %22 {offsets = [1, 0], sizes = [1, 256], strides = [1, 1]} : vector<18x256xf32> to vector<1x256xf32>
      %35 = arith.mulf %32, %34 : vector<1x256xf32>
      %36 = arith.addf %31, %35 : vector<1x256xf32>
      %37 = vector.extract_strided_slice %22 {offsets = [10, 0], sizes = [1, 256], strides = [1, 1]} : vector<18x256xf32> to vector<1x256xf32>
      %38 = arith.mulf %33, %37 : vector<1x256xf32>
      %39 = arith.addf %36, %38 : vector<1x256xf32>
      %c15_i32 = arith.constant 15 : i32
      %40 = tpu.dynamic_rotate %20 by %c15_i32 dim 1 : vector<1x256xf32>, i32 -> vector<1x256xf32>
      %c15_i32_24 = arith.constant 15 : i32
      %41 = tpu.dynamic_rotate %21 by %c15_i32_24 dim 1 : vector<1x256xf32>, i32 -> vector<1x256xf32>
      %42 = vector.extract_strided_slice %22 {offsets = [2, 0], sizes = [1, 256], strides = [1, 1]} : vector<18x256xf32> to vector<1x256xf32>
      %43 = arith.mulf %40, %42 : vector<1x256xf32>
      %44 = arith.addf %39, %43 : vector<1x256xf32>
      %45 = vector.extract_strided_slice %22 {offsets = [11, 0], sizes = [1, 256], strides = [1, 1]} : vector<18x256xf32> to vector<1x256xf32>
      %46 = arith.mulf %41, %45 : vector<1x256xf32>
      %47 = arith.addf %44, %46 : vector<1x256xf32>
      %c1_i32 = arith.constant 1 : i32
      %48 = tpu.dynamic_rotate %20 by %c1_i32 dim 1 : vector<1x256xf32>, i32 -> vector<1x256xf32>
      %c1_i32_25 = arith.constant 1 : i32
      %49 = tpu.dynamic_rotate %21 by %c1_i32_25 dim 1 : vector<1x256xf32>, i32 -> vector<1x256xf32>
      %50 = vector.extract_strided_slice %22 {offsets = [3, 0], sizes = [1, 256], strides = [1, 1]} : vector<18x256xf32> to vector<1x256xf32>
      %51 = arith.mulf %48, %50 : vector<1x256xf32>
      %52 = arith.addf %47, %51 : vector<1x256xf32>
      %53 = vector.extract_strided_slice %22 {offsets = [12, 0], sizes = [1, 256], strides = [1, 1]} : vector<18x256xf32> to vector<1x256xf32>
      %54 = arith.mulf %49, %53 : vector<1x256xf32>
      %55 = arith.addf %52, %54 : vector<1x256xf32>
      %56 = vector.extract_strided_slice %22 {offsets = [4, 0], sizes = [1, 256], strides = [1, 1]} : vector<18x256xf32> to vector<1x256xf32>
      %57 = arith.mulf %20, %56 : vector<1x256xf32>
      %58 = arith.addf %55, %57 : vector<1x256xf32>
      %59 = vector.extract_strided_slice %22 {offsets = [13, 0], sizes = [1, 256], strides = [1, 1]} : vector<18x256xf32> to vector<1x256xf32>
      %60 = arith.mulf %21, %59 : vector<1x256xf32>
      %61 = arith.addf %58, %60 : vector<1x256xf32>
      %c255_i32 = arith.constant 255 : i32
      %62 = tpu.dynamic_rotate %20 by %c255_i32 dim 1 : vector<1x256xf32>, i32 -> vector<1x256xf32>
      %c255_i32_26 = arith.constant 255 : i32
      %63 = tpu.dynamic_rotate %21 by %c255_i32_26 dim 1 : vector<1x256xf32>, i32 -> vector<1x256xf32>
      %64 = vector.extract_strided_slice %22 {offsets = [5, 0], sizes = [1, 256], strides = [1, 1]} : vector<18x256xf32> to vector<1x256xf32>
      %65 = arith.mulf %62, %64 : vector<1x256xf32>
      %66 = arith.addf %61, %65 : vector<1x256xf32>
      %67 = vector.extract_strided_slice %22 {offsets = [14, 0], sizes = [1, 256], strides = [1, 1]} : vector<18x256xf32> to vector<1x256xf32>
      %68 = arith.mulf %63, %67 : vector<1x256xf32>
      %69 = arith.addf %66, %68 : vector<1x256xf32>
      %c241_i32 = arith.constant 241 : i32
      %70 = tpu.dynamic_rotate %20 by %c241_i32 dim 1 : vector<1x256xf32>, i32 -> vector<1x256xf32>
      %c241_i32_27 = arith.constant 241 : i32
      %71 = tpu.dynamic_rotate %21 by %c241_i32_27 dim 1 : vector<1x256xf32>, i32 -> vector<1x256xf32>
      %72 = vector.extract_strided_slice %22 {offsets = [6, 0], sizes = [1, 256], strides = [1, 1]} : vector<18x256xf32> to vector<1x256xf32>
      %73 = arith.mulf %70, %72 : vector<1x256xf32>
      %74 = arith.addf %69, %73 : vector<1x256xf32>
      %75 = vector.extract_strided_slice %22 {offsets = [15, 0], sizes = [1, 256], strides = [1, 1]} : vector<18x256xf32> to vector<1x256xf32>
      %76 = arith.mulf %71, %75 : vector<1x256xf32>
      %77 = arith.addf %74, %76 : vector<1x256xf32>
      %c240_i32 = arith.constant 240 : i32
      %78 = tpu.dynamic_rotate %20 by %c240_i32 dim 1 : vector<1x256xf32>, i32 -> vector<1x256xf32>
      %c240_i32_28 = arith.constant 240 : i32
      %79 = tpu.dynamic_rotate %21 by %c240_i32_28 dim 1 : vector<1x256xf32>, i32 -> vector<1x256xf32>
      %80 = vector.extract_strided_slice %22 {offsets = [7, 0], sizes = [1, 256], strides = [1, 1]} : vector<18x256xf32> to vector<1x256xf32>
      %81 = arith.mulf %78, %80 : vector<1x256xf32>
      %82 = arith.addf %77, %81 : vector<1x256xf32>
      %83 = vector.extract_strided_slice %22 {offsets = [16, 0], sizes = [1, 256], strides = [1, 1]} : vector<18x256xf32> to vector<1x256xf32>
      %84 = arith.mulf %79, %83 : vector<1x256xf32>
      %85 = arith.addf %82, %84 : vector<1x256xf32>
      %c239_i32 = arith.constant 239 : i32
      %86 = tpu.dynamic_rotate %20 by %c239_i32 dim 1 : vector<1x256xf32>, i32 -> vector<1x256xf32>
      %c239_i32_29 = arith.constant 239 : i32
      %87 = tpu.dynamic_rotate %21 by %c239_i32_29 dim 1 : vector<1x256xf32>, i32 -> vector<1x256xf32>
      %88 = vector.extract_strided_slice %22 {offsets = [8, 0], sizes = [1, 256], strides = [1, 1]} : vector<18x256xf32> to vector<1x256xf32>
      %89 = arith.mulf %86, %88 : vector<1x256xf32>
      %90 = arith.addf %85, %89 : vector<1x256xf32>
      %91 = vector.extract_strided_slice %22 {offsets = [17, 0], sizes = [1, 256], strides = [1, 1]} : vector<18x256xf32> to vector<1x256xf32>
      %92 = arith.mulf %87, %91 : vector<1x256xf32>
      %93 = arith.addf %90, %92 : vector<1x256xf32>
      %c0_30 = arith.constant 0 : index
      %c0_31 = arith.constant 0 : index
      %c0_32 = arith.constant 0 : index
      %94 = vector.load %arg4[%c0_30, %c0_31, %c0_32] : memref<1x1x256xf32, #tpu.memory_space<vmem>>, vector<1x1x256xf32>
      %95 = vector.shape_cast %94 : vector<1x1x256xf32> to vector<1x256xf32>
      %96 = vector.shape_cast %93 : vector<1x256xf32> to vector<1x1x256xf32>
      tpu.vector_store %arg4[%c0_30, %c0_31, %c0_32], %96 {strides = array<i32>} : memref<1x1x256xf32, #tpu.memory_space<vmem>>, vector<1x1x256xf32>,
    } else {
    }
    return
  }
  func.func @transform_0(%arg0: i32, %arg1: i32) -> (i32, i32) {
    %c0_i32 = arith.constant 0 : i32
    %c0_i32_0 = arith.constant 0 : i32
    %c0_i32_1 = arith.constant 0 : i32
    return %c0_i32, %c0_i32_0 : i32, i32
  }
  func.func @transform_1(%arg0: i32, %arg1: i32) -> (i32, i32, i32) {
    %c0_i32 = arith.constant 0 : i32
    %c0_i32_0 = arith.constant 0 : i32
    return %arg0, %arg1, %c0_i32 : i32, i32, i32
  }
  func.func @transform_2(%arg0: i32, %arg1: i32) -> (i32, i32, i32) {
    %c0_i32 = arith.constant 0 : i32
    %c0_i32_0 = arith.constant 0 : i32
    %c0_i32_1 = arith.constant 0 : i32
    return %arg0, %c0_i32, %c0_i32_0 : i32, i32, i32
  }
}

</mosaic_0001>

<bundles_post_ra>
// kernel: tpu_custom_call.1
= control target key start
LH: loop header
LB: loop body
LE: loop exit
PB: predicated region body
PF: predicated region fallthrough
CT: control target
= control target key end

     0   :  { %7 = vsyncpa [#allocation5], 0  ;;  %s1425_s0 = inlined_call_operand.hbm [shape: f32[18,256], index: 0, kind: input, shape index: {}]   ;;  %s1426_s1 = inlined_call_operand.hbm [shape: f32[2,4,256], index: 1, kind: input, shape index: {}]   ;;  %s1427_s2 = inlined_call_operand.hbm [shape: f32[2,1,256], index: 2, kind: output, shape index: {}]  }
   0x1   :  { %8 = vsyncpa [#allocation8], 0 }
   0x2   :  { %10 = vsyncpa [#allocation8 + $0x1], 0 }
   0x3   :  { %11 = vsyncpa [#allocation6], 0 }
   0x4   :  { %13 = vsyncpa [#allocation6 + $0x1], 0  ;;  %s1015_s9 = smov 0   ;;  %s1017_s10 = smov 0  }
   0x5   :  { %s1019_s11 = smov 0   ;;  %s1021_s12 = smov 0  }
   0x6   :  { %s1023_s13 = smov 0   ;;  %s1025_s14 = smov 0  }
   0x7 LB: > { %s730_s15 = sadd.s32 4294967295, %s982_s14   ;;  %s731_s16 = sadd.s32 4294967294, %s982_s14   ;;  %s982_s14 = sphi %s1025_s14, %s19_s14   ;;  %s978_s13 = sphi %s1023_s13, %s1453_s13   ;;  %s974_s12 = sphi %s1021_s12, %s1452_s12   ;;  %s970_s11 = sphi %s1019_s11, %s1451_s11   ;;  %s966_s10 = sphi %s1017_s10, %s1450_s10   ;;  %s962_s9 = sphi %s1015_s9, %s1449_s9  }
   0x8   : > { %p74_p0 = scmp.ne.s32.totalorder %s966_s10, %s962_s9  ;;  %p1049_p1 = scmp.eq.s32.totalorder %s730_s15, 0 }
   0x9   : > { %p1053_p2 = scmp.eq.s32.totalorder %s730_s15, 1  ;;  %p104_p3 = scmp.eq.s32.totalorder %s731_s16, 1 }
   0xa   : > { %s1432_s17 = scalar_select %p1049_p1, 1, 0 }
   0xb   : > { %s1433_s18 = scalar_select %p1053_p2, 1, 0 }
   0xc   : > { %p1059_p4 = por %p1049_p1, %p74_p0  ;;  %p732_p5 = scmp.ge.s32.totalorder %s982_s14, 1 }
   0xd   : > { %p1064_p6 = por %p104_p3, %p74_p0  ;;  %p111_p7 = scmp.lt.s32.totalorder %s982_s14, 3 }
   0xe   : > { %s1434_s19 = scalar_select %p1059_p4, 1, 0 }
   0xf   : > { %s1435_s20 = scalar_select %p1064_p6, 1, 0 }
  0x10   : > { %p1069_p8 = pnand %p732_p5, %p111_p7  ;;  %s984_s22 = smov [#allocation4]  }
  0x11   : > { %s123_s23 = sshll.u32 %s984_s22, 4  ;;  %s31_s25 = sadd.s32 1, %s978_s13  ;;  %s124_s23 = int_to_ptr.vmem [resolvable:$true] %s123_s23 }
  0x12   : > { %s1436_s21 = scalar_select %p1069_p8, 1, 0 }
  0x13   : > { %p757_p9 = pneg %p1069_p8  ;;  %s838_s28 = scalar_lea.hbm %s1425_s0, 768 }
  0x14   : > { %p839_p12 = scmp.ne.s32.totalorder %s1425_s0, %s838_s28  ;;  %p845_p5 = scmp.lt.u32.totalorder %s838_s28, %s1425_s0 }
  0x15   : > { %p1078_p11 = pnand %p757_p9, %p1049_p1 }
  0x17   : > { %p840_p13 = pneg %p1078_p11 }
  0x19   : > { %p841_p0 = pnand %p840_p13, %p839_p12 }
  0x1b   : > { %p842_p3 = pneg %p841_p0 }
  0x1d   : > { %p847_p7 = pnand %p845_p5, %p842_p3 }
  0x1f   : > { %850 = shalt.err (!%p847_p7)
}
  0x20   : > { %s851_s5 = scalar_lea.vmem %s124_s23, 768  ;;  %p859_p4 = scmp.lt.s32.totalorder %s124_s23, %s124_s23 }
  0x21   : > { %p852_p9 = scmp.ne.s32.totalorder %s124_s23, %s851_s5  ;;  %p860_p1 = scmp.lt.s32.totalorder %s851_s5, %s851_s5 }
  0x23   : > { %p854_p10 = pnand %p852_p9, %p840_p13  ;;  %p861_p8 = por %p860_p1, %p859_p4 }
  0x25   : > { %p855_p6 = pneg %p854_p10 }
  0x27   : > { %p862_p2 = pnand %p861_p8, %p855_p6 }
  0x29   : > { %865 = shalt.err (!%p862_p2)
}
  0x2a   : > { %s985_s6 = smov 256   ;;  %s986_s7 = smov 16  }
  0x2b   : > { %760 = dma.hbm_to_vmem [thread:$0]  (!%p1078_p11), %s1425_s0, 768, %s124_s23, [#allocation5], %s985_s6, %s985_s6, %s986_s7  }
  0x2c   : > { %p33_p1 = scmp.ge.s32.totalorder %s31_s25, 2  ;;  %s61_s16 = sadd.s32 1, %s970_s11 }
  0x2d   : > { %p68_p2 = scmp.ne.s32.totalorder %s970_s11, %s966_s10  ;;  %p69_p4 = scmp.eq.s32.totalorder %s982_s14, 0 }
  0x2e   : > { %s1455_s25 = smov (%p33_p1, %s31_s25), 0  ;;  %p1439_p8 = scmp.ne.s32.totalorder %s1433_s18, 0 }
  0x2f   : > { %p1105_p6 = por %p69_p4, %p68_p2  ;;  %s56_s24 = ssub.s32 %s978_s13, %s1455_s25 }
  0x30   : > { %p1111_p10 = por %p1439_p8, %p68_p2  ;;  %p770_p12 = scmp.lt.s32.totalorder %s982_s14, 2 }
  0x31   : > { %p59_p11 = scmp.eq.s32.totalorder %s56_s24, 0  ;;  %s137_s23 = sand.u32 1, %s970_s11  }
  0x32   : > { %s735_s27 = sshll.u32 %s137_s23, 3  ;;  %s747_s29 = sshll.u32 %s978_s13, 7 }
  0x33   : > { %s1120_s28 = scalar_select %p59_p11, %s970_s11, %s61_s16  }
  0x34   : > { %s1126_s4 = scalar_lea.hbm %s1426_s1, %s747_s29  ;;  %s141_s18 = scalar_lea.vmem [#allocation7], %s735_s27 }
  0x35   : > { %s151_s5 = sshll.u32 %s141_s18, 4  ;;  %p1132_p13 = pnand %p770_p12, %p1105_p6  ;;  %s1128_s5 = int_to_ptr.vmem [resolvable:$true] %s151_s5 }
  0x36   : > { %s138_s7 = scalar_lea.sflag [#allocation8], %s137_s23  ;;  %s866_s8 = scalar_lea.hbm %s1126_s4, 128 }
  0x37   : > { %p867_p0 = scmp.ne.s32.totalorder %s1126_s4, %s866_s8  ;;  %p868_p3 = pneg %p1132_p13 }
  0x38   : > { %s871_s24 = scalar_lea.hbm %s1426_s1, 256  ;;  %p872_p9 = scmp.lt.u32.totalorder %s1126_s4, %s1426_s1 }
  0x39   : > { %p869_p5 = pnand %p868_p3, %p867_p0  ;;  %p873_p1 = scmp.lt.u32.totalorder %s871_s24, %s866_s8 }
  0x3a   : > { %p875_p4 = scmp.lt.u32.totalorder %s866_s8, %s1126_s4 }
  0x3b   : > { %p870_p7 = pneg %p869_p5  ;;  %p874_p2 = por %p873_p1, %p872_p9 }
  0x3d   : > { %p876_p6 = por %p875_p4, %p874_p2 }
  0x3f   : > { %p877_p8 = pnand %p876_p6, %p870_p7 }
  0x41   : > { %880 = shalt.err (!%p877_p8)
}
  0x42   : > { %s881_s23 = scalar_lea.vmem %s1128_s5, 128  ;;  %s987_s29 = smov [#allocation7]  }
  0x43   : > { %p882_p12 = scmp.ne.s32.totalorder %s1128_s5, %s881_s23  ;;  %s886_s30 = sshll.u32 %s987_s29, 4  ;;  %s887_s30 = int_to_ptr.vmem [resolvable:$false] %s886_s30 }
  0x44   : > { %s888_s3 = scalar_lea.vmem %s887_s30, 256  ;;  %p889_p5 = scmp.lt.s32.totalorder %s1128_s5, %s887_s30 }
  0x45   : > { %p884_p11 = pnand %p882_p12, %p868_p3  ;;  %p890_p9 = scmp.lt.s32.totalorder %s888_s3, %s881_s23 }
  0x47   : > { %p885_p0 = pneg %p884_p11  ;;  %p891_p1 = por %p890_p9, %p889_p5 }
  0x49   : > { %p892_p2 = pnand %p891_p1, %p885_p0 }
  0x4b   : > { %895 = shalt.err (!%p892_p2)
}
  0x4c   : > { %764 = dma.hbm_to_vmem [thread:$0]  (!%p1132_p13), %s1126_s4, 128, %s1128_s5, %s138_s7  }
  0x4d   : > { %p1442_p7 = scmp.ne.s32.totalorder %s1436_s21, 0 }
  0x4e   : > { %p1443_p3 = scmp.ne.s32.totalorder (!%p1442_p7), %s1432_s17, 0 }
  0x4f   : > { %160 = sbr.rel (%p1442_p7) target bundleno = 325 (0x145), region = 28 }
  0x56   : > { %949 = dma.done.wait (%p1443_p3), [#allocation5], 768  }
  0x57   : > { %951 = vsyncadd (%p1443_p3), [#allocation5], 4294966528  ;;  %s1168_s18 = sand.u32 1, %s966_s10   ;;  %p1444_p4 = scmp.ne.s32.totalorder %s1434_s19, 0 }
  0x58   : > { %s740_s8 = sshll.u32 %s1168_s18, 3  ;;  %s167_s6 = scalar_lea.sflag [#allocation8], %s1168_s18 }
  0x59   : > { %s170_s15 = scalar_lea.vmem [#allocation7], %s740_s8 }
  0x5a   : > { %953 = dma.done.wait (%p1444_p4), %s167_s6, 128  }
  0x5b   : > { %955 = vsyncadd (%p1444_p4), %s167_s6, 4294967168  ;;  %v195_v0 = vlaneseq  ;;  %v988_v2 = vmov -inf   ;;  %v989_v3 = vmov 0.0   ;;  %vm206_vm1 = vcmask 1043456   ;;  %v201_v4 = vld [vmem:[%s170_s15] sm:$0xff]  ;;  %s991_s17 = smov 16  }
  0x5c   : > { %v204_v5 = vcombine.high %v201_v4, %v201_v4  ;;  %v207_v6 = vsel %vm206_vm1, %v201_v4, 0.0  ;;  %v246_v7 = vsel %vm206_vm1, %v201_v4, -inf  ;;  %v990_v16 = vmov 1966171168   ;;  %s992_s19 = smov 17   ;;  %s993_s21 = smov 15  }
  0x5d   : > { %vm1177_vm0 = vcmp.lt.s32.totalorder %v195_v0, 256  ;;  %v208_v8 = vrot.slane %v207_v6, 4  ;;  %v247_v9 = vrot.slane %v246_v7, 4  ;;  %v225_v17 = vunpack.c.l.s4 %v990_v16  ;;  %s994_s4 = smov 1   ;;  %s995_s5 = smov 127   ;;  %v1209_v57 = vld [vmem:[#allocation4 + $0x10] sm:$0xff] }
  0x5e   : > { %200 = vst.msk [vmem:[#allocation3] sm:$0x3] %vm1177_vm0, %v988_v2  ;;  %199 = vst.msk [vmem:[#allocation2] sm:$0x3] %vm1177_vm0, %v989_v3  ;;  %v214_v10 = vsel %vm206_vm1, %v204_v5, 0.0  ;;  %v253_v11 = vsel %vm206_vm1, %v204_v5, -inf }
  0x5f   : > { %v209_v12 = vadd.f32 %v208_v8, %v207_v6  ;;  %v215_v13 = vrot.slane %v214_v10, 4  ;;  %v248_v14 = vmax.f32 %v246_v7, %v247_v9  ;;  %v254_v15 = vrot.slane %v253_v11, 4  ;;  %v1211_v58 = vld [vmem:[#allocation4 + $0x18] sm:$0xff]  ;;  %v1213_v59 = vld [vmem:[#allocation4] sm:$0xff]  ;;  %v1215_v60 = vld [vmem:[#allocation4 + $0x8] sm:$0xff]  ;;  %s996_s7 = smov 113  }
  0x60   : > { %v226_v26 = vunpack.c.0.s8 %v225_v17  ;;  %v228_v27 = vshrl.u32 %v195_v0, 7  ;;  %v432_v62 = vcombine.high %v1213_v59, %v1215_v60  ;;  %v462_v63 = vcombine.high %v1209_v57, %v1211_v58  ;;  %s997_s16 = smov 112   ;;  %s998_s24 = smov 111  }
  0x61   : > { %v210_v18 = vrot.slane %v209_v12, 2  ;;  %v216_v19 = vadd.f32 %v215_v13, %v214_v10  ;;  %v249_v20 = vrot.slane %v248_v14, 2  ;;  %v255_v21 = vmax.f32 %v253_v11, %v254_v15  ;;  %s741_s22 = sshll.u32 %s1168_s18, 1  ;;  %s748_s27 = sshll.u32 %s974_s12, 5 }
  0x62   : > { %v1186_v37 = vsub.s32 %v226_v26, %v228_v27  ;;  %v1196_v49 = vsub.s32 0, %v228_v27  ;;  %v1198_v50 = vsub.s32 1, %v228_v27  ;;  %s190_s23 = scalar_lea.vmem [#allocation9], %s741_s22  ;;  %s1374_s8 = scalar_lea.hbm %s1427_s2, %s748_s27 }
  0x63   : > { %v211_v22 = vadd.f32 %v210_v18, %v209_v12  ;;  %v217_v23 = vrot.slane %v216_v19, 2  ;;  %v250_v24 = vmax.f32 %v248_v14, %v249_v20  ;;  %v256_v25 = vrot.slane %v255_v21, 2  ;;  %s637_s29 = sshll.u32 %s190_s23, 4  ;;  %s623_s12 = scalar_lea.sflag [#allocation6], %s1168_s18  ;;  %s1376_s29 = int_to_ptr.vmem [resolvable:$true] %s637_s29 }
  0x64   : > { %v439_v2 = vrot.slane %v432_v62, %v1186_v37  ;;  %v469_v3 = vrot.slane %v462_v63, %v1186_v37  ;;  %s896_s6 = scalar_lea.vmem %s1376_s29, 32  ;;  %s999_s15 = smov [#allocation9]  }
  0x65   : > { %v212_v28 = vrot.slane %v211_v22, 1  ;;  %v218_v29 = vadd.f32 %v217_v23, %v216_v19  ;;  %v251_v30 = vrot.slane %v250_v24, 1  ;;  %v257_v31 = vmax.f32 %v255_v21, %v256_v25  ;;  %v245_v43 = vld [vmem:[#allocation3] sm:$0x3]  ;;  %v202_v44 = vld [vmem:[#allocation2] sm:$0x3]  ;;  %p897_p13 = scmp.ne.s32.totalorder %s1376_s29, %s896_s6 }
  0x66   : > { %v446_v4 = vrot.slane %v439_v2, %v1186_v37  ;;  %v470_v5 = vcombine.high %v469_v3, %v469_v3  ;;  %v1253_v21 = vand.u32 127, %v195_v0  ;;  %v336_v25 = vrot.slane %v1211_v58, 1 }
  0x67   : > { %v213_v32 = vadd.f32 %v212_v28, %v211_v22  ;;  %v219_v33 = vrot.slane %v218_v29, 1  ;;  %v252_v34 = vmax.f32 %v250_v24, %v251_v30  ;;  %v258_v35 = vrot.slane %v257_v31, 1  ;;  %p898_p6 = pnand %p897_p13, %p1111_p10 }
  0x68   : > { %v477_v7 = vrot.slane %v470_v5, %v1186_v37  ;;  %vm309_vm2 = vcmp.lt.s32.totalorder %v1253_v21, 17  ;;  %v335_v24 = vrot.slane %v1209_v57, 1  ;;  %vm347_vm3 = vcmp.lt.s32.totalorder %v1253_v21, 16 }
  0x69   : > { %v220_v36 = vadd.f32 %v219_v33, %v218_v29  ;;  %v259_v38 = vmax.f32 %v257_v31, %v258_v35  ;;  %v358_v33 = vrot.slane %v1213_v59, 1  ;;  %v366_v35 = vrot.slane %v1209_v57, 2  ;;  %p899_p8 = pneg %p898_p6 }
  0x6a   : > { %vm378_vm4 = vcmp.lt.s32.totalorder %v1253_v21, 15  ;;  %vm407_vm5 = vcmp.lt.s32.totalorder %v1253_v21, 1  ;;  %vm497_vm6 = vcmp.lt.s32.totalorder %v1253_v21, 127  ;;  %vm526_vm7 = vcmp.lt.s32.totalorder %v1253_v21, 113 }
  0x6b   : > { %v223_v39 = vcombine.low %v213_v32, %v220_v36  ;;  %v262_v40 = vcombine.low %v252_v34, %v259_v38  ;;  %v359_v34 = vrot.slane %v1215_v60, 1  ;;  %v367_v36 = vrot.slane %v1211_v58, 2 }
  0x6c   : > { %v395_v38 = vrot.slane %v1209_v57, 3  ;;  %vm555_vm8 = vcmp.lt.s32.totalorder %v1253_v21, 112  ;;  %vm580_vm9 = vcmp.lt.s32.totalorder %v1253_v21, 111 }
  0x6d   : > { %v230_v41 = vrot.slane %v223_v39, %v1186_v37  ;;  %v269_v42 = vrot.slane %v262_v40, %v1186_v37 }
  0x6f   : > { %v237_v45 = vrot.slane %v230_v41, %v1186_v37  ;;  %v276_v46 = vrot.slane %v269_v42, %v1186_v37 }
  0x71   : > { %v278_v47 = vmax.f32 %v245_v43, %v276_v46  ;;  %v239_v48 = vadd.f32 %v237_v45, %v202_v44  ;;  %v387_v43 = vrot.slane %v1213_v59, 2  ;;  %v388_v44 = vrot.slane %v1215_v60, 2 }
  0x73   : > { %279 = vst.msk [vmem:[#allocation3] sm:$0x3] %vm1177_vm0, %v278_v47  ;;  %244 = vst.msk [vmem:[#allocation2] sm:$0x3] %vm1177_vm0, %v239_v48 }
  0x7a   : > { %v285_v51 = vld [vmem:[#allocation3] sm:$0x3]  ;;  %v283_v54 = vld [vmem:[#allocation2] sm:$0x3] }
  0x7b   : > { %v316_v52 = vrot.slane %v285_v51, %v1196_v49  ;;  %v320_v53 = vrot.slane %v285_v51, %v1198_v50  ;;  %v284_v55 = vmul.f32 0.25, %v283_v54  ;;  %v1236_v10 = vmul.f32 %v477_v7, %v285_v51 }
  0x7d   : > { %350 = vrot.lane.b32.xlu0 %v316_v52, %s991_s17  ;;  %323 = vrot.lane.b32.xlu1 %v316_v52, %s992_s19  ;;  %v296_v56 = vrot.slane %v284_v55, %v1196_v49  ;;  %v300_v61 = vrot.slane %v284_v55, %v1198_v50  ;;  %v1227_v6 = vmul.f32 %v446_v4, %v284_v55  ;;  %v396_v55 = vrot.slane %v1211_v58, 3 }
  0x7e   : > { %v484_v11 = vrot.slane %v1236_v10, %v1196_v49  ;;  %v488_v12 = vrot.slane %v1236_v10, %v1198_v50 }
  0x7f   : > { %v453_v8 = vrot.slane %v1227_v6, %v1196_v49  ;;  %v457_v9 = vrot.slane %v1227_v6, %v1198_v50  ;;  %v543_v6 = vrot.slane %v1209_v57, 7 }
  0x81   : > { %381 = vrot.lane.b32.xlu0 %v316_v52, %s993_s21  ;;  %325 = vrot.lane.b32.xlu1 %v320_v53, %s992_s19 }
  0x85   : > { %410 = vrot.lane.b32.xlu0 %v316_v52, %s994_s4  ;;  %352 = vrot.lane.b32.xlu1 %v320_v53, %s991_s17 }
  0x89   : > { %500 = vrot.lane.b32.xlu0 %v316_v52, %s995_s5  ;;  %383 = vrot.lane.b32.xlu1 %v320_v53, %s993_s21 }
  0x8d   : > { %412 = vrot.lane.b32.xlu1 %v320_v53, %s994_s4  ;;  %303 = vrot.lane.b32.xlu0 %v296_v56, %s992_s19 }
  0x91   : > { %502 = vrot.lane.b32.xlu1 %v320_v53, %s995_s5  ;;  %305 = vrot.lane.b32.xlu0 %v300_v61, %s992_s19 }
  0x95   : > { %345 = vrot.lane.b32.xlu1 %v300_v61, %s991_s17  ;;  %343 = vrot.lane.b32.xlu0 %v296_v56, %s991_s17  ;;  %s900_s17 = sshll.u32 %s999_s15, 4  ;;  %s901_s17 = int_to_ptr.vmem [resolvable:$false] %s900_s17 }
  0x96   : > { %s902_s19 = scalar_lea.vmem %s901_s17, 64  ;;  %p903_p12 = scmp.lt.s32.totalorder %s1376_s29, %s901_s17 }
  0x97   : > { %p904_p11 = scmp.lt.s32.totalorder %s902_s19, %s896_s6 }
  0x99   : > { %376 = vrot.lane.b32.xlu1 %v300_v61, %s993_s21  ;;  %374 = vrot.lane.b32.xlu0 %v296_v56, %s993_s21  ;;  %p905_p0 = por %p904_p11, %p903_p12 }
  0x9b   : > { %p906_p5 = pnand %p905_p0, %p899_p8 }
  0x9d   : > { %405 = vrot.lane.b32.xlu1 %v300_v61, %s994_s4  ;;  %403 = vrot.lane.b32.xlu0 %v296_v56, %s994_s4 }
  0xa1   : > { %495 = vrot.lane.b32.xlu1 %v300_v61, %s995_s5  ;;  %493 = vrot.lane.b32.xlu0 %v296_v56, %s995_s5 }
  0xa5   : > { %524 = vrot.lane.b32.xlu1 %v300_v61, %s996_s7  ;;  %522 = vrot.lane.b32.xlu0 %v296_v56, %s996_s7 }
  0xa9   : > { %531 = vrot.lane.b32.xlu1 %v320_v53, %s996_s7  ;;  %529 = vrot.lane.b32.xlu0 %v316_v52, %s996_s7 }
  0xad   : > { %553 = vrot.lane.b32.xlu1 %v300_v61, %s997_s16  ;;  %551 = vrot.lane.b32.xlu0 %v296_v56, %s997_s16 }
  0xb1   : > { %560 = vrot.lane.b32.xlu1 %v320_v53, %s997_s16  ;;  %558 = vrot.lane.b32.xlu0 %v316_v52, %s997_s16 }
  0xb5   : > { %578 = vrot.lane.b32.xlu1 %v300_v61, %s998_s24  ;;  %576 = vrot.lane.b32.xlu0 %v296_v56, %s998_s24  ;;  %v416_v56 = vrot.slane %v1213_v59, 3  ;;  %v417_v61 = vrot.slane %v1215_v60, 3 }
  0xb9   : > { %585 = vrot.lane.b32.xlu1 %v320_v53, %s998_s24  ;;  %583 = vrot.lane.b32.xlu0 %v316_v52, %s998_s24 }
  0xef   : > { %v351_v13 = vpop.permute.xlu0 %350  ;;  %v324_v14 = vpop.permute.xlu1 %323 }
  0xf3   : > { %v382_v15 = vpop.permute.xlu0 %381  ;;  %v326_v16 = vpop.permute.xlu1 %325 }
  0xf4   : > { %v327_v28 = vsel %vm309_vm2, %v324_v14, %v326_v16  ;;  %v328_v29 = vsel %vm309_vm2, %v326_v16, %v324_v14 }
  0xf5   : > { %v339_v39 = vmul.f32 %v335_v24, %v328_v29  ;;  %v340_v40 = vmul.f32 %v336_v25, %v327_v28  ;;  %v425_v28 = vrot.slane %v1211_v58, 4 }
  0xf7   : > { %v1248_v17 = vpop.permute.xlu0 %410  ;;  %v353_v18 = vpop.permute.xlu1 %352 }
  0xf8   : > { %v354_v45 = vsel %vm347_vm3, %v351_v13, %v353_v18  ;;  %v355_v46 = vsel %vm347_vm3, %v353_v18, %v351_v13 }
  0xf9   : > { %v370_v62 = vmul.f32 %v366_v35, %v355_v46  ;;  %v371_v63 = vmul.f32 %v367_v36, %v354_v45 }
  0xfb   : > { %v1250_v19 = vpop.permute.xlu0 %500  ;;  %v384_v20 = vpop.permute.xlu1 %383 }
  0xfc   : > { %v385_v7 = vsel %vm378_vm4, %v382_v15, %v384_v20  ;;  %v386_v13 = vsel %vm378_vm4, %v384_v20, %v382_v15 }
  0xfd   : > { %v399_v29 = vmul.f32 %v395_v38, %v386_v13 }
  0xff   : > { %v413_v22 = vpop.permute.xlu1 %412  ;;  %v304_v23 = vpop.permute.xlu0 %303 }
 0x100   : > { %v414_v20 = vsel %vm407_vm5, %v1248_v17, %v413_v22 }
 0x103   : > { %v1259_v26 = vpop.permute.xlu1 %502  ;;  %v306_v27 = vpop.permute.xlu0 %305 }
 0x104   : > { %v310_v30 = vsel %vm309_vm2, %v304_v23, %v306_v27  ;;  %v311_v31 = vsel %vm309_vm2, %v306_v27, %v304_v23  ;;  %v424_v27 = vrot.slane %v1209_v57, 4 }
 0x105   : > { %v329_v0 = vmul.f32 %v311_v31, %v1213_v59  ;;  %v330_v32 = vmul.f32 %v310_v30, %v1215_v60  ;;  %v400_v30 = vmul.f32 %v396_v55, %v385_v7 }
 0x107   : > { %v346_v41 = vpop.permute.xlu1 %345  ;;  %v344_v42 = vpop.permute.xlu0 %343  ;;  %v341_v51 = vadd.f32 %v339_v39, %v329_v0  ;;  %v342_v52 = vadd.f32 %v340_v40, %v330_v32 }
 0x108   : > { %v348_v47 = vsel %vm347_vm3, %v344_v42, %v346_v41  ;;  %v349_v48 = vsel %vm347_vm3, %v346_v41, %v344_v42  ;;  %v429_v42 = vmul.f32 %v425_v28, %v414_v20 }
 0x109   : > { %v362_v53 = vmul.f32 %v358_v33, %v349_v48  ;;  %v363_v54 = vmul.f32 %v359_v34, %v348_v47  ;;  %v415_v33 = vsel %vm407_vm5, %v413_v22, %v1248_v17  ;;  %v506_v22 = vrot.slane %v1213_v59, 5 }
 0x10a   : > { %v428_v41 = vmul.f32 %v424_v27, %v415_v33  ;;  %v507_v48 = vrot.slane %v1215_v60, 5 }
 0x10b   : > { %v364_v2 = vadd.f32 %v362_v53, %v341_v51  ;;  %v365_v3 = vadd.f32 %v363_v54, %v342_v52  ;;  %v377_v4 = vpop.permute.xlu1 %376  ;;  %v375_v5 = vpop.permute.xlu0 %374  ;;  %v514_v51 = vrot.slane %v1209_v57, 6  ;;  %v515_v52 = vrot.slane %v1211_v58, 6 }
 0x10c   : > { %v379_v14 = vsel %vm378_vm4, %v375_v5, %v377_v4  ;;  %v380_v16 = vsel %vm378_vm4, %v377_v4, %v375_v5 }
 0x10d   : > { %v372_v18 = vadd.f32 %v370_v62, %v364_v2  ;;  %v373_v23 = vadd.f32 %v371_v63, %v365_v3  ;;  %v391_v24 = vmul.f32 %v387_v43, %v380_v16  ;;  %v392_v25 = vmul.f32 %v388_v44, %v379_v14 }
 0x10e   : > { %v535_v62 = vrot.slane %v1213_v59, 6  ;;  %v504_v2 = vsel %vm497_vm6, %v1250_v19, %v1259_v26  ;;  %v536_v3 = vrot.slane %v1215_v60, 6 }
 0x10f   : > { %v393_v31 = vadd.f32 %v391_v24, %v372_v18  ;;  %v394_v0 = vadd.f32 %v392_v25, %v373_v23  ;;  %v406_v32 = vpop.permute.xlu1 %405  ;;  %v404_v15 = vpop.permute.xlu0 %403  ;;  %v518_v14 = vmul.f32 %v514_v51, %v504_v2  ;;  %v565_v24 = vrot.slane %v1215_v60, 7 }
 0x110   : > { %v408_v34 = vsel %vm407_vm5, %v404_v15, %v406_v32  ;;  %v409_v35 = vsel %vm407_vm5, %v406_v32, %v404_v15 }
 0x111   : > { %v401_v36 = vadd.f32 %v399_v29, %v393_v31  ;;  %v402_v38 = vadd.f32 %v400_v30, %v394_v0  ;;  %v420_v39 = vmul.f32 %v416_v56, %v409_v35  ;;  %v421_v40 = vmul.f32 %v417_v61, %v408_v34 }
 0x113   : > { %v422_v43 = vadd.f32 %v420_v39, %v401_v36  ;;  %v423_v44 = vadd.f32 %v421_v40, %v402_v38  ;;  %v496_v45 = vpop.permute.xlu1 %495  ;;  %v494_v46 = vpop.permute.xlu0 %493  ;;  %v290_v38 = vld [vmem:[#allocation4 + $0x20] sm:$0x3]  ;;  %v291_v39 = vld [vmem:[#allocation4 + $0x28] sm:$0x3] }
 0x114   : > { %v498_v53 = vsel %vm497_vm6, %v494_v46, %v496_v45  ;;  %v499_v54 = vsel %vm497_vm6, %v496_v45, %v494_v46 }
 0x115   : > { %v430_v47 = vadd.f32 %v428_v41, %v422_v43  ;;  %v431_v17 = vadd.f32 %v429_v42, %v423_v44  ;;  %v510_v5 = vmul.f32 %v506_v22, %v498_v53  ;;  %v511_v7 = vmul.f32 %v507_v48, %v499_v54 }
 0x117   : > { %v460_v55 = vadd.f32 %v453_v8, %v430_v47  ;;  %v461_v56 = vadd.f32 %v457_v9, %v431_v17  ;;  %v525_v61 = vpop.permute.xlu1 %524  ;;  %v523_v63 = vpop.permute.xlu0 %522  ;;  %v505_v8 = vsel %vm497_vm6, %v1259_v26, %v1250_v19  ;;  %v544_v26 = vrot.slane %v1211_v58, 7 }
 0x118   : > { %v527_v13 = vsel %vm526_vm7, %v523_v63, %v525_v61  ;;  %v528_v19 = vsel %vm526_vm7, %v525_v61, %v523_v63  ;;  %v519_v16 = vmul.f32 %v515_v52, %v505_v8  ;;  %v596_v61 = vrot.slane %v291_v39, 1 }
 0x119   : > { %v491_v9 = vadd.f32 %v484_v11, %v460_v55  ;;  %v492_v4 = vadd.f32 %v488_v12, %v461_v56  ;;  %v564_v12 = vrot.slane %v1213_v59, 7  ;;  %v539_v28 = vmul.f32 %v535_v62, %v527_v13 }
 0x11a   : > { %v540_v29 = vmul.f32 %v536_v3, %v528_v19  ;;  %v595_v56 = vrot.slane %v290_v38, 1 }
 0x11b   : > { %v512_v49 = vadd.f32 %v510_v5, %v491_v9  ;;  %v513_v11 = vadd.f32 %v511_v7, %v492_v4  ;;  %v532_v18 = vpop.permute.xlu1 %531  ;;  %v530_v23 = vpop.permute.xlu0 %529 }
 0x11c   : > { %v533_v50 = vsel %vm526_vm7, %v530_v23, %v532_v18  ;;  %v534_v10 = vsel %vm526_vm7, %v532_v18, %v530_v23 }
 0x11d   : > { %v520_v25 = vadd.f32 %v518_v14, %v512_v49  ;;  %v521_v27 = vadd.f32 %v519_v16, %v513_v11  ;;  %v547_v0 = vmul.f32 %v543_v6, %v533_v50  ;;  %v548_v32 = vmul.f32 %v544_v26, %v534_v10 }
 0x11f   : > { %v541_v30 = vadd.f32 %v539_v28, %v520_v25  ;;  %v542_v31 = vadd.f32 %v540_v29, %v521_v27  ;;  %v554_v15 = vpop.permute.xlu1 %553  ;;  %v552_v20 = vpop.permute.xlu0 %551 }
 0x120   : > { %v556_v33 = vsel %vm555_vm8, %v552_v20, %v554_v15  ;;  %v557_v34 = vsel %vm555_vm8, %v554_v15, %v552_v20 }
 0x121   : > { %v549_v35 = vadd.f32 %v547_v0, %v541_v30  ;;  %v550_v59 = vadd.f32 %v548_v32, %v542_v31  ;;  %v568_v36 = vmul.f32 %v564_v12, %v556_v33  ;;  %v569_v60 = vmul.f32 %v565_v24, %v557_v34 }
 0x123   : > { %v570_v40 = vadd.f32 %v568_v36, %v549_v35  ;;  %v571_v41 = vadd.f32 %v569_v60, %v550_v59  ;;  %v561_v42 = vpop.permute.xlu1 %560  ;;  %v559_v43 = vpop.permute.xlu0 %558 }
 0x124   : > { %v562_v44 = vsel %vm555_vm8, %v559_v43, %v561_v42  ;;  %v563_v45 = vsel %vm555_vm8, %v561_v42, %v559_v43 }
 0x125   : > { %v572_v46 = vmul.f32 %v562_v44, %v290_v38  ;;  %v573_v47 = vmul.f32 %v563_v45, %v291_v39 }
 0x127   : > { %v574_v17 = vadd.f32 %v572_v46, %v570_v40  ;;  %v575_v22 = vadd.f32 %v573_v47, %v571_v41  ;;  %v579_v48 = vpop.permute.xlu1 %578  ;;  %v577_v51 = vpop.permute.xlu0 %576 }
 0x128   : > { %v581_v52 = vsel %vm580_vm9, %v577_v51, %v579_v48  ;;  %v582_v53 = vsel %vm580_vm9, %v579_v48, %v577_v51 }
 0x129   : > { %v589_v54 = vmul.f32 %v581_v52, %v1209_v57  ;;  %v590_v55 = vmul.f32 %v582_v53, %v1211_v58 }
 0x12b   : > { %v591_v62 = vadd.f32 %v589_v54, %v574_v17  ;;  %v592_v63 = vadd.f32 %v590_v55, %v575_v22  ;;  %v586_v2 = vpop.permute.xlu1 %585  ;;  %v584_v8 = vpop.permute.xlu0 %583 }
 0x12c   : > { %v587_v3 = vsel %vm580_vm9, %v584_v8, %v586_v2  ;;  %v588_v6 = vsel %vm580_vm9, %v586_v2, %v584_v8 }
 0x12d   : > { %v599_v9 = vmul.f32 %v595_v56, %v587_v3  ;;  %v600_v57 = vmul.f32 %v596_v61, %v588_v6 }
 0x12f   : > { %v601_v4 = vadd.f32 %v599_v9, %v591_v62  ;;  %v602_v5 = vadd.f32 %v600_v57, %v592_v63 }
 0x131   : > { %v605_v58 = vcombine.low %v601_v4, %v602_v5 }
 0x133   : > { %v612_v7 = vrot.slane %v605_v58, %v1186_v37 }
 0x135   : > { %v619_v13 = vrot.slane %v612_v7, %v1186_v37 }
 0x137   : > { %621 = vst.msk [vmem:[%s190_s23] sm:$0x3] %vm1177_vm0, %v619_v13 }
 0x138   : > { %909 = shalt.err (!%p906_p5)
}
 0x139   : > { %s910_s18 = scalar_lea.hbm %s1374_s8, 32  ;;  %s914_s5 = scalar_lea.hbm %s1427_s2, 64 }
 0x13a   : > { %p911_p9 = scmp.ne.s32.totalorder %s1374_s8, %s910_s18  ;;  %p915_p7 = scmp.lt.u32.totalorder %s1374_s8, %s1427_s2 }
 0x13b   : > { %p916_p3 = scmp.lt.u32.totalorder %s914_s5, %s910_s18  ;;  %p918_p13 = scmp.lt.u32.totalorder %s910_s18, %s1374_s8 }
 0x13c   : > { %p912_p1 = pnand %p911_p9, %p1111_p10 }
 0x13d   : > { %p917_p4 = por %p916_p3, %p915_p7 }
 0x13e   : > { %p913_p2 = pneg %p912_p1 }
 0x13f   : > { %p919_p6 = por %p918_p13, %p917_p4 }
 0x141   : > { %p920_p8 = pnand %p919_p6, %p913_p2 }
 0x143   : > { %923 = shalt.err (!%p920_p8)
}
 0x144   : > { %755 = dma.vmem_to_hbm [thread:$0]  (%p1111_p10), %s1376_s29, 32, %s1374_s8, %s623_s12  }
 0x145 PF: > { %s649_s24 = sand.u32 1, %s962_s9   ;;  %p1447_p12 = scmp.ne.s32.totalorder %s1435_s20, 0 }
 0x146   : > { %p1448_p11 = scmp.ge.s32.totalorder %s982_s14, 2  ;;  %s650_s22 = scalar_lea.sflag [#allocation6], %s649_s24 }
 0x148   : > { %p766_p0 = pnand %p1448_p11, %p1447_p12 }
 0x14a   : > { %957 = dma.done.wait (!%p766_p0), %s650_s22, 32  }
 0x14b   : > { %959 = vsyncadd (!%p766_p0), %s650_s22, 4294967264  ;;  %s19_s14 = sadd.s32 1, %s982_s14   ;;  %s1449_s9 = smov %s966_s10 }
 0x14c   : > { %p16_p5 = scmp.ge.s32.totalorder %s19_s14, 4   ;;  %s1450_s10 = smov %s970_s11 }
 0x14d   : > { %s1451_s11 = smov %s1120_s28  ;;  %s1452_s12 = smov %s978_s13 }
 0x14e   : > { %s1453_s13 = smov %s1455_s25  ;;  %18 = sbr.rel (!%p16_p5) target bundleno = 7 (0x7), region = 86 }
 0x155   :  { %655 = vsyncpa [#allocation5], 1 }
 0x156   :  { %657 = vsyncpa [#allocation5 + $0x1], 1 }
 0x157   :  { %658 = vsyncpa [#allocation8], 1 }
 0x158   :  { %660 = vsyncpa [#allocation8 + $0x1], 1 }
 0x159   :  { %661 = vsyncpa [#allocation6], 1 }
 0x15a   :  { %663 = vsyncpa [#allocation6 + $0x1], 1 }

</bundles_post_ra>
